<compile_context>
chip_gen: v7x
topology: tpu7x:2x2x1
jax: 0.10.0
libtpu: 0.0.40
codegen_flags: <defaults>
</compile_context>

<pallas_src>
import jax
import jax.numpy as jnp
from jax.experimental import pallas as pl
from jax.experimental.pallas import tpu as pltpu


def _round_up(n, m):
    return ((n + m - 1) // m) * m


def _vmem_capacity_bytes():
    """Per-core VMEM capacity; conservative fallback if the query is unavailable."""
    try:
        cap = getattr(pltpu.get_tpu_info(), "vmem_capacity_bytes", None)
        if cap:
            return int(cap)
    except Exception:
        pass
    return 64 * 1024 * 1024      # v7x per-TC VMEM; safe lower bound everywhere


def cross_network_kernel(x_ref, wt_ref, b_ref, o_ref):
    # x_ref : [TB, D]  one batch tile (full feature dim; last tile may be ragged)
    # wt_ref: [D,  L]  per-layer Linear(D, 1, bias=False) weights, pre-transposed
    # b_ref : [L,  D]  per-layer bias parameters
    # o_ref : [TB, D]
    num_layers = b_ref.shape[0]                 # static, small -> unrolled loop
    x0 = x_ref[...].astype(jnp.float32)         # hoisted: one read + cast per tile
    x = x0                                      # running x_l, accumulated in f32
    for i in range(num_layers):
        w_col = wt_ref[:, i:i + 1].astype(jnp.float32)     # [D, 1] lane slice
        b_i = b_ref[i, :].astype(jnp.float32)              # [D]
        # Row-wise dot x_l . w_i on the MXU: [TB, D] @ [D, 1] -> [TB, 1].
        xl_wl = jnp.dot(x, w_col, preferred_element_type=jnp.float32)
        x = x0 * xl_wl + b_i[None, :] + x
    o_ref[...] = x.astype(o_ref.dtype)


def cross_network(x, w, b, *, batch_tile=None):
    """x: [B, D]; w: [L, D] (row i = layer-i Linear(D,1,bias=False) weight);
    b: [L, D]. Returns [B, D], matching PyTorch CrossNetwork.forward."""
    B, D = x.shape
    L = w.shape[0]
    itemsize = jnp.dtype(x.dtype).itemsize
    sub = max(8, 32 // itemsize)               # dtype-native sublane multiple

    # ---- Generation-aware VMEM budget (v5e/v6e: 128 MiB, v7x: 64 MiB). -----
    vmem_cap = _vmem_capacity_bytes()
    vmem_limit = min((vmem_cap * 3) // 4, 96 * 1024 * 1024)   # scoped limit
    budget = (vmem_limit * 3) // 4                            # working-set target

    if batch_tile is None:
        # Per-row working set: in/out double buffers at the I/O dtype plus the
        # f32 values live in the kernel (x0, x, ~3 elementwise temporaries).
        per_row = 4 * D * itemsize + 5 * D * 4
        # Resident (grid-invariant) buffers: wt [D, L] is lane-padded to 128
        # lanes, b [L, D] sublane-padded to 8 rows; both double-buffered.
        resident = 2 * (D * 128 * 4 + 8 * _round_up(D, 128) * 4)
        tb_vmem = max(sub, (budget - resident) // per_row)
        # Target ~8 MiB of HBM traffic (in + out) per grid step so the fixed
        # ~0.35 us per-step overhead stays well under 10-15% of step time.
        tb_traffic = max(sub, (8 * 1024 * 1024) // max(1, 2 * D * itemsize))
        # Guarantee >= 2 grid steps whenever B permits (v7x megacore split and
        # DMA-pipeline steady state).
        tb_two_step = max(sub, _round_up((B + 1) // 2, sub))
        tb = min(tb_vmem, tb_traffic, tb_two_step)
    else:
        tb = batch_tile
    if tb >= B:
        tb = B                              # single block == full dim (always legal)
    else:
        tb = max(sub, (tb // sub) * sub)    # sublane-aligned (divisible by 8)

    grid = (pl.cdiv(B, tb),)

    cost = pl.CostEstimate(
        flops=(2 + 3) * L * grid[0] * tb * D,          # dot + elementwise per layer
        transcendentals=0,
        bytes_accessed=(2 * grid[0] * tb * D + 2 * L * D) * itemsize,
    )

    return pl.pallas_call(
        cross_network_kernel,
        out_shape=jax.ShapeDtypeStruct((B, D), x.dtype),
        grid=grid,
        in_specs=[
            pl.BlockSpec((tb, D), lambda i: (i, 0)),   # x: tiled over batch
            pl.BlockSpec((D, L), lambda i: (0, 0)),    # w^T: VMEM-resident
            pl.BlockSpec((L, D), lambda i: (0, 0)),    # b:   VMEM-resident
        ],
        out_specs=pl.BlockSpec((tb, D), lambda i: (i, 0)),
        compiler_params=pltpu.CompilerParams(
            dimension_semantics=("parallel",),
            vmem_limit_bytes=vmem_limit,
        ),
        cost_estimate=cost,
    )(x, jnp.transpose(w), b)


def cross_network_ref(x, w, b):
    """Pure-JAX reference mirroring the PyTorch forward exactly."""
    x0 = x
    for i in range(w.shape[0]):
        xl_wl = x @ w[i][:, None]          # [B, 1]
        x = x0 * xl_wl + b[i][None, :] + x
    return x


if __name__ == "__main__":
    # Small shapes consistent with the module: x is [batch, embed_dim*field_dim].
    B, D, L = 8, 32, 3

    key = jax.random.PRNGKey(0)
    kx, kw, kb = jax.random.split(key, 3)
    x = jax.random.normal(kx, (B, D), dtype=jnp.float32)
    # Per-layer Linear(D, 1, bias=False) weights and bias parameters.
    w = jax.random.normal(kw, (L, D), dtype=jnp.float32) * 0.1
    b = jax.random.normal(kb, (L, D), dtype=jnp.float32) * 0.01

    out = jax.block_until_ready(cross_network(x, w, b))
    ref = cross_network_ref(x, w, b)

    assert out.shape == (B, D)
    assert jnp.allclose(out, ref, atol=1e-5, rtol=1e-5)

    print("KERNEL_OK")
</pallas_src>

<mosaic_0001>
module attributes {stable_mosaic.version = 11 : i64} {
  func.func @cross_network_kernel(%arg0: i32, %arg1: memref<8x32xf32, #tpu.memory_space<vmem>>, %arg2: memref<32x3xf32, #tpu.memory_space<vmem>>, %arg3: memref<3x32xf32, #tpu.memory_space<vmem>>, %arg4: memref<8x32xf32, #tpu.memory_space<vmem>>) attributes {dimension_semantics = [#tpu.dimension_semantics<parallel>], iteration_bounds = array<i64: 1>, scalar_prefetch = 0 : i64, scratch_operands = 0 : i64, tpu.core_type = #tpu.core_type<tc>, window_params = [{transform_indices = @transform_0, window_bounds = array<i64: 8, 32>}, {pipeline_mode = #tpu.pipeline_mode<synchronous>, transform_indices = @transform_1, window_bounds = array<i64: 32, 3>}, {pipeline_mode = #tpu.pipeline_mode<synchronous>, transform_indices = @transform_2, window_bounds = array<i64: 3, 32>}, {transform_indices = @transform_3, window_bounds = array<i64: 8, 32>}]} {
    %c0 = arith.constant 0 : index
    %c0_0 = arith.constant 0 : index
    %0 = vector.load %arg1[%c0, %c0_0] : memref<8x32xf32, #tpu.memory_space<vmem>>, vector<8x32xf32>
    %c0_1 = arith.constant 0 : index
    %c0_2 = arith.constant 0 : index
    %1 = vector.load %arg2[%c0_1, %c0_2] : memref<32x3xf32, #tpu.memory_space<vmem>>, vector<32x1xf32>
    %c0_3 = arith.constant 0 : index
    %c0_4 = arith.constant 0 : index
    %2 = vector.load %arg3[%c0_3, %c0_4] : memref<3x32xf32, #tpu.memory_space<vmem>>, vector<1x32xf32>
    %3 = vector.shape_cast %2 : vector<1x32xf32> to vector<32xf32>
    %cst = arith.constant dense<0.000000e+00> : vector<8x1xf32>
    %4 = tpu.matmul %0, %1, %cst {dimension_numbers = #tpu.dot_dimension_numbers<[1], [0], [0], [1], [0, 0, 1, 1], [], []>} : vector<8x32xf32>, vector<32x1xf32>, vector<8x1xf32> -> vector<8x1xf32>
    %5 = vector.broadcast %4 : vector<8x1xf32> to vector<8x32xf32>
    %6 = arith.mulf %0, %5 : vector<8x32xf32>
    %7 = vector.shape_cast %3 : vector<32xf32> to vector<1x32xf32>
    %8 = vector.broadcast %7 : vector<1x32xf32> to vector<8x32xf32>
    %9 = arith.addf %6, %8 : vector<8x32xf32>
    %10 = arith.addf %9, %0 : vector<8x32xf32>
    %c0_5 = arith.constant 0 : index
    %c1 = arith.constant 1 : index
    %11 = vector.load %arg2[%c0_5, %c1] : memref<32x3xf32, #tpu.memory_space<vmem>>, vector<32x1xf32>
    %c1_6 = arith.constant 1 : index
    %c0_7 = arith.constant 0 : index
    %12 = vector.load %arg3[%c1_6, %c0_7] : memref<3x32xf32, #tpu.memory_space<vmem>>, vector<1x32xf32>
    %13 = vector.shape_cast %12 : vector<1x32xf32> to vector<32xf32>
    %cst_8 = arith.constant dense<0.000000e+00> : vector<8x1xf32>
    %14 = tpu.matmul %10, %11, %cst_8 {dimension_numbers = #tpu.dot_dimension_numbers<[1], [0], [0], [1], [0, 0, 1, 1], [], []>} : vector<8x32xf32>, vector<32x1xf32>, vector<8x1xf32> -> vector<8x1xf32>
    %15 = vector.broadcast %14 : vector<8x1xf32> to vector<8x32xf32>
    %16 = arith.mulf %0, %15 : vector<8x32xf32>
    %17 = vector.shape_cast %13 : vector<32xf32> to vector<1x32xf32>
    %18 = vector.broadcast %17 : vector<1x32xf32> to vector<8x32xf32>
    %19 = arith.addf %16, %18 : vector<8x32xf32>
    %20 = arith.addf %19, %10 : vector<8x32xf32>
    %c0_9 = arith.constant 0 : index
    %c2 = arith.constant 2 : index
    %21 = vector.load %arg2[%c0_9, %c2] : memref<32x3xf32, #tpu.memory_space<vmem>>, vector<32x1xf32>
    %c2_10 = arith.constant 2 : index
    %c0_11 = arith.constant 0 : index
    %22 = vector.load %arg3[%c2_10, %c0_11] : memref<3x32xf32, #tpu.memory_space<vmem>>, vector<1x32xf32>
    %23 = vector.shape_cast %22 : vector<1x32xf32> to vector<32xf32>
    %cst_12 = arith.constant dense<0.000000e+00> : vector<8x1xf32>
    %24 = tpu.matmul %20, %21, %cst_12 {dimension_numbers = #tpu.dot_dimension_numbers<[1], [0], [0], [1], [0, 0, 1, 1], [], []>} : vector<8x32xf32>, vector<32x1xf32>, vector<8x1xf32> -> vector<8x1xf32>
    %25 = vector.broadcast %24 : vector<8x1xf32> to vector<8x32xf32>
    %26 = arith.mulf %0, %25 : vector<8x32xf32>
    %27 = vector.shape_cast %23 : vector<32xf32> to vector<1x32xf32>
    %28 = vector.broadcast %27 : vector<1x32xf32> to vector<8x32xf32>
    %29 = arith.addf %26, %28 : vector<8x32xf32>
    %30 = arith.addf %29, %20 : vector<8x32xf32>
    %c0_13 = arith.constant 0 : index
    %c0_14 = arith.constant 0 : index
    %31 = vector.load %arg4[%c0_13, %c0_14] : memref<8x32xf32, #tpu.memory_space<vmem>>, vector<8x32xf32>
    tpu.vector_store %arg4[%c0_13, %c0_14], %30 {strides = array<i32>} : memref<8x32xf32, #tpu.memory_space<vmem>>, vector<8x32xf32>,
    return
  }
  func.func @transform_0(%arg0: i32) -> (i32, i32) {
    %c0_i32 = arith.constant 0 : i32
    %c0_i32_0 = arith.constant 0 : i32
    return %arg0, %c0_i32 : i32, i32
  }
  func.func @transform_1(%arg0: i32) -> (i32, i32) {
    %c0_i32 = arith.constant 0 : i32
    %c0_i32_0 = arith.constant 0 : i32
    %c0_i32_1 = arith.constant 0 : i32
    return %c0_i32, %c0_i32_0 : i32, i32
  }
  func.func @transform_2(%arg0: i32) -> (i32, i32) {
    %c0_i32 = arith.constant 0 : i32
    %c0_i32_0 = arith.constant 0 : i32
    %c0_i32_1 = arith.constant 0 : i32
    return %c0_i32, %c0_i32_0 : i32, i32
  }
  func.func @transform_3(%arg0: i32) -> (i32, i32) {
    %c0_i32 = arith.constant 0 : i32
    %c0_i32_0 = arith.constant 0 : i32
    return %arg0, %c0_i32 : i32, i32
  }
}

</mosaic_0001>

<bundles_post_ra>
// kernel: tpu_custom_call.1
= control target key start
LH: loop header
LB: loop body
LE: loop exit
PB: predicated region body
PF: predicated region fallthrough
CT: control target
= control target key end

     0   :  { %v447_v3 = vmov 0.0|0.0   ;;  %vm448_vm0 = vmmov 0   ;;  %v449_v6 = vmov 0.0   ;;  %s517_s0 = inlined_call_operand.vmem [shape: f32[8,32], index: 0, kind: input, shape index: {}]   ;;  %s518_s1 = inlined_call_operand.vmem [shape: f32[32,3], index: 1, kind: input, shape index: {}]   ;;  %s519_s2 = inlined_call_operand.vmem [shape: f32[3,32], index: 2, kind: input, shape index: {}]   ;;  %s520_s3 = inlined_call_operand.hbm [shape: f32[8,32], index: 3, kind: output, shape index: {}]  }
   0x1   :  { %v16_v0 = vld [vmem:[%s518_s1] sm:$0xff]  ;;  %v17_v1 = vld [vmem:[%s518_s1 + $0x8] sm:$0xff]  ;;  %v18_v2 = vld [vmem:[%s518_s1 + $0x10] sm:$0xff]  ;;  %376 = vmatprep.subr.bf16.mxu0 %v447_v3  ;;  %351 = vmatprep.mubr.msk.f32.mxu0 %vm448_vm0, %v449_v6 }
   0x2   :  { %v377_v4 = vpack.c.bf16 %v17_v1, %v16_v0  ;;  %v19_v5 = vld [vmem:[%s518_s1 + $0x18] sm:$0xff] }
   0x3   :  { %8 = vsyncpa [#allocation3], 0  ;;  %v450_v7 = vmov 0   ;;  %382 = vmatprep.subr.bf16.mxu1 %v447_v3  ;;  %v380_v8 = vpack.c.bf16 %v19_v5, %v18_v2  ;;  %362 = vmatprep.mubr.msk.f32.mxu1 %vm448_vm0, %v449_v6  ;;  %v15_v9 = vld [vmem:[%s517_s0] sm:$0xff]  ;;  %vm21_vm1 = vcmask 261120   ;;  %v407_v10 = vpack.i.bf16 %v19_v5, %v18_v2  ;;  %s451_s1 = smov 127  }
   0x4   :  { %401 = vset.pattern.permute.xlu0 %v450_v7  ;;  %378 = vmatpush3.bf16.msra.mxu0 %v377_v4  ;;  %v402_v13 = vpack.i.bf16 %v17_v1, %v16_v0  ;;  %v323_v22 = vld [vmem:[%s519_s2] ss:$0 sm:$0xff]  ;;  %s452_s23 = smov 126   ;;  %v325_v35 = vld [vmem:[%s519_s2 + $0x1] ss:$0 sm:$0xff]  ;;  %s453_s28 = smov [#allocation2]  }
   0x5   :  { %379 = vmatprep.subr.bf16.mxu0 %v447_v3  ;;  %412 = vset.pattern.permute.xlu1 %v450_v7  ;;  %v327_v44 = vld [vmem:[%s519_s2 + $0x2] ss:$0 sm:$0xff]  ;;  %s314_s29 = sshll.u32 %s453_s28, 4  ;;  %s315_s29 = int_to_ptr.vmem [resolvable:$true] %s314_s29 }
   0x6   :  { %408 = vrot.lane.b32.xlu1 %v407_v10, %s451_s1  ;;  %s423_s30 = scalar_lea.vmem %s315_s29, 128  ;;  %p428_p1 = scmp.lt.s32.totalorder %s315_s29, %s315_s29 }
   0x7   :  { %p424_p0 = scmp.ne.s32.totalorder %s315_s29, %s423_s30  ;;  %p429_p2 = scmp.lt.s32.totalorder %s423_s30, %s423_s30 }
   0x8   :  { %381 = vmatpush3.bf16.msra.mxu0 %v380_v8 }
   0x9   :  { %388 = vmatprep.subr.bf16.mxu0 %v447_v3  ;;  %p430_p3 = por %p429_p2, %p428_p1 }
   0xb   :  { %352 = vmatmul.mubr.msk.f32.vlgmr.msra.gmra.mrb[0].mxu0 %vm21_vm1, %v15_v9  ;;  %p431_p4 = pnand %p430_p3, %p424_p0 }
   0xc   :  { %373 = vmatprep.mubr.msk.f32.mxu0 %vm448_vm0, %v449_v6 }
  0x78   :  { %v409_v15 = vpop.permute.xlu1 %408 }
  0x79   :  { %v411_v19 = vunpack.i.h.bf16 %v409_v15  ;;  %v410_v20 = vunpack.i.l.bf16 %v409_v15 }
  0x7b   :  { %v386_v24 = vpack.c.bf16 %v411_v19, %v410_v20 }
  0xde   :  { %v91_v11 = vpop.f32.mrb[0].mxu0 }
  0xdf   :  { %97 = vperm.xlu0 %401, %v91_v11   ;;  %v353_v12 = vpop.f32.mrb[1].mxu0 }
  0xe3   :  { %403 = vrot.lane.b32.xlu0 %v402_v13, %s451_s1 }
  0xe7   :  { %414 = vrot.lane.b32.xlu0 %v402_v13, %s452_s23 }
 0x15e   :  { %v98_v14 = vpop.permute.xlu0 %97 }
 0x15f   :  { %v100_v21 = vmul.f32 %v98_v14, %v15_v9 }
 0x161   :  { %v105_v25 = vadd.f32 %v323_v22, %v100_v21 }
 0x162   :  { %v404_v16 = vpop.permute.xlu0 %403 }
 0x163   :  { %v406_v17 = vunpack.i.h.bf16 %v404_v16  ;;  %v405_v18 = vunpack.i.l.bf16 %v404_v16  ;;  %v106_v26 = vadd.f32 %v105_v25, %v15_v9 }
 0x165   :  { %v383_v23 = vpack.c.bf16 %v406_v17, %v405_v18 }
 0x166   :  { %v415_v27 = vpop.permute.xlu0 %414 }
 0x167   :  { %384 = vmatpush3.bf16.msra.mxu1 %v383_v23  ;;  %v417_v28 = vunpack.i.h.bf16 %v415_v27  ;;  %v416_v29 = vunpack.i.l.bf16 %v415_v27 }
 0x168   :  { %385 = vmatprep.subr.bf16.mxu1 %v447_v3 }
 0x169   :  { %v389_v30 = vpack.c.bf16 %v417_v28, %v416_v29 }
 0x16b   :  { %387 = vmatpush3.bf16.msra.mxu1 %v386_v24  ;;  %390 = vmatpush3.bf16.msra.mxu0 %v389_v30 }
 0x16c   :  { %391 = vmatprep.subr.bf16.mxu0 %v447_v3 }
 0x16e   :  { %363 = vmatmul.mubr.msk.f32.vlgmr.msra.gmra.mrb[0].mxu1 %vm21_vm1, %v106_v26 }
 0x241   :  { %v193_v31 = vpop.f32.mrb[0].mxu1 }
 0x242   :  { %199 = vperm.xlu1 %412, %v193_v31   ;;  %v364_v32 = vpop.f32.mrb[1].mxu1 }
 0x246   :  { %419 = vrot.lane.b32.xlu1 %v407_v10, %s452_s23 }
 0x2c1   :  { %v200_v33 = vpop.permute.xlu1 %199 }
 0x2c2   :  { %v202_v34 = vmul.f32 %v200_v33, %v15_v9 }
 0x2c4   :  { %v207_v39 = vadd.f32 %v325_v35, %v202_v34 }
 0x2c5   :  { %v420_v36 = vpop.permute.xlu1 %419 }
 0x2c6   :  { %v422_v37 = vunpack.i.h.bf16 %v420_v36  ;;  %v421_v38 = vunpack.i.l.bf16 %v420_v36  ;;  %v208_v41 = vadd.f32 %v207_v39, %v106_v26 }
 0x2c8   :  { %v392_v40 = vpack.c.bf16 %v422_v37, %v421_v38 }
 0x2ca   :  { %393 = vmatpush3.bf16.msra.mxu0 %v392_v40 }
 0x2cd   :  { %374 = vmatmul.mubr.msk.f32.vlgmr.msra.gmra.mrb[2].mxu0 %vm21_vm1, %v208_v41 }
 0x3a0   :  { %v291_v42 = vpop.f32.mrb[2].mxu0 }
 0x3a1   :  { %297 = vperm.xlu0 %401, %v291_v42   ;;  %v375_v43 = vpop.f32.mrb[3].mxu0 }
 0x420   :  { %v298_v45 = vpop.permute.xlu0 %297 }
 0x421   :  { %v300_v46 = vmul.f32 %v298_v45, %v15_v9 }
 0x423   :  { %v305_v47 = vadd.f32 %v327_v44, %v300_v46 }
 0x425   :  { %v306_v48 = vadd.f32 %v305_v47, %v208_v41 }
 0x427   :  { %307 = vst.msk [vmem:[#allocation2] sm:$0xff] %vm21_vm1, %v306_v48 }
 0x428   :  { %434 = shalt.err (!%p431_p4)
}
 0x429   :  { %s435_s2 = scalar_lea.hbm %s520_s3, 128 }
 0x42a   :  { %p436_p5 = scmp.ne.s32.totalorder %s520_s3, %s435_s2  ;;  %p439_p6 = scmp.lt.u32.totalorder %s435_s2, %s520_s3 }
 0x42c   :  { %p441_p7 = pnand %p439_p6, %p436_p5 }
 0x42e   :  { %444 = shalt.err (!%p441_p7)
}
 0x42f   :  { %317 = dma.vmem_to_hbm [thread:$0]  %s315_s29, 128, %s520_s3, [#allocation3]  }
 0x430   :  { %445 = dma.done.wait [#allocation3], 128  }
 0x431   :  { %446 = vsyncadd [#allocation3], 4294967168 }
 0x432   :  { %321 = vsyncpa [#allocation3], 1 }

</bundles_post_ra>
